<compile_context>
chip_gen: v7x
topology: tpu7x:2x2x1
jax: 0.10.0
libtpu: 0.0.40
codegen_flags: <defaults>
</compile_context>

<pallas_src>
import functools

import jax
import jax.numpy as jnp
from jax.experimental import pallas as pl
from jax.experimental.pallas import tpu as pltpu


def _round_up(x, m):
    return ((x + m - 1) // m) * m


def _npair_loss_kernel(feat_ref, right_ref, wrong_ref, out_ref, *,
                       batch_size, num_wrong, ninp):
    """One batch tile -> per-block partial sums.

    feat_ref  : (tb, D)
    right_ref : (tb, D)
    wrong_ref : (tb, W*D)     lane-dense flattened negatives
    out_ref   : (1, 1, 128)   lanes 0..3 = [loss_dis, sum r^2, sum f^2, sum w^2]
    """
    step = pl.program_id(0)
    tb = feat_ref.shape[0]

    feat = feat_ref[...].astype(jnp.float32)      # (tb, D)
    right = right_ref[...].astype(jnp.float32)    # (tb, D)
    wrong = wrong_ref[...].astype(jnp.float32)    # (tb, W*D)

    # Rows beyond the true batch (partial edge block) contain undefined data;
    # mask every per-row quantity (select, not multiply, so inf/nan can't leak).
    row_idx = step * tb + jax.lax.broadcasted_iota(jnp.int32, (tb, 1), 0)
    valid = row_idx < batch_size                                   # (tb, 1)

    right_dis = jnp.sum(right * feat, axis=-1, keepdims=True)      # (tb, 1)

    # Segmented dot products over the flattened negatives; static lane slices
    # keep the block lane-dense (no (W, D) sublane/lane padding, no reshape).
    wrong_score = jnp.zeros((tb, 1), jnp.float32)
    for w in range(num_wrong):
        w_blk = wrong[:, w * ninp:(w + 1) * ninp]                  # (tb, D)
        wd = jnp.sum(w_blk * feat, axis=-1, keepdims=True)         # (tb, 1)
        wrong_score = wrong_score + jnp.exp(wd - right_dis)

    per_row = jnp.where(valid, jnp.log(wrong_score + 1.0), 0.0)    # (tb, 1)

    rs_rows = jnp.where(valid, jnp.sum(right * right, axis=-1, keepdims=True), 0.0)
    fs_rows = jnp.where(valid, jnp.sum(feat * feat, axis=-1, keepdims=True), 0.0)
    ws_rows = jnp.where(valid, jnp.sum(wrong * wrong, axis=-1, keepdims=True), 0.0)

    s_ld = jnp.sum(per_row, keepdims=True)       # (1, 1)
    s_rs = jnp.sum(rs_rows, keepdims=True)
    s_fs = jnp.sum(fs_rows, keepdims=True)
    s_ws = jnp.sum(ws_rows, keepdims=True)

    # Lane-dense partial row for this block (unmasked 128-lane store).
    lane = jax.lax.broadcasted_iota(jnp.int32, (1, 1, 128), 2)
    out_ref[...] = (jnp.where(lane == 0, s_ld, 0.0)
                    + jnp.where(lane == 1, s_rs, 0.0)
                    + jnp.where(lane == 2, s_fs, 0.0)
                    + jnp.where(lane == 3, s_ws, 0.0))


def npair_loss_ref(feat, right, wrong):
    """Pure-JAX reference mirroring the PyTorch forward (fake=None)."""
    B = feat.shape[0]
    right_dis = jnp.sum(right * feat, axis=-1, keepdims=True)
    wrong_dis = jnp.einsum("bwd,bd->bw", wrong, feat)
    wrong_score = jnp.sum(jnp.exp(wrong_dis - right_dis), axis=-1)
    loss_dis = jnp.sum(jnp.log(wrong_score + 1.0))
    loss_norm = (jnp.linalg.norm(right) + jnp.linalg.norm(feat)
                 + jnp.linalg.norm(wrong))
    return (loss_dis + 0.1 * loss_norm) / B


def npair_loss(feat, right, wrong, *, max_rows_per_step=1024, force_pallas=False):
    """feat: (B, D), right: (B, D), wrong: (B, W, D) -> scalar loss (fake=None)."""
    B, D = feat.shape
    _, W, _ = wrong.shape

    # Small-problem fast path: tiny inputs are pure launch/step overhead in a
    # Pallas kernel; let XLA fuse them instead.
    total_bytes = (2 * B * D + B * W * D) * feat.dtype.itemsize
    if total_bytes < (1 << 20) and not force_pallas:
        return npair_loss_ref(feat, right, wrong)

    wrong_flat = wrong.reshape(B, W * D)          # free reshape; lane-dense DMA

    # Honest (physically padded) VMEM budget: f32 compute copies, lanes padded
    # to 128, double-buffered input DMA.  Stays well under the 32 MiB scoped
    # limit on every generation (and v7x's 64 MiB physical VMEM).
    bytes_per_row = 4 * (2 * _round_up(D, 128) + _round_up(W * D, 128))
    vmem_budget = 12 * 1024 * 1024
    budget_tb = max(8, (vmem_budget // (2 * bytes_per_row)) // 8 * 8)

    if B <= 8:
        tb = B                                    # single (full-dim) block
    else:
        tb = min((B // 8) * 8, budget_tb, max(8, (max_rows_per_step // 8) * 8))

    num_blocks = pl.cdiv(B, tb)
    kernel = functools.partial(_npair_loss_kernel, batch_size=B,
                               num_wrong=W, ninp=D)

    partials = pl.pallas_call(
        kernel,
        out_shape=jax.ShapeDtypeStruct((num_blocks, 1, 128), jnp.float32),
        grid=(num_blocks,),
        in_specs=[
            pl.BlockSpec((tb, D), lambda i: (i, 0)),
            pl.BlockSpec((tb, D), lambda i: (i, 0)),
            pl.BlockSpec((tb, W * D), lambda i: (i, 0)),
        ],
        out_specs=pl.BlockSpec((1, 1, 128), lambda i: (i, 0, 0)),
        compiler_params=pltpu.CompilerParams(
            # No carried state -> batch axis is parallel (uses both TCs on v7x).
            dimension_semantics=("parallel",),
            vmem_limit_bytes=32 * 1024 * 1024,
        ),
    )(feat, right, wrong_flat)

    p = jnp.sum(partials, axis=(0, 1))            # (128,): global partial sums
    loss_dis = p[0]
    # sqrt of the globally accumulated sum-of-squares (true Frobenius norms).
    loss_norm = jnp.sqrt(p[1]) + jnp.sqrt(p[2]) + jnp.sqrt(p[3])
    return (loss_dis + 0.1 * loss_norm) / B


if __name__ == "__main__":
    key = jax.random.PRNGKey(0)

    # Case 1: tiny shapes consistent with the module (ninp=32, batch=4, 8 negs),
    # forced through the Pallas path.
    B, W, D = 4, 8, 32
    k1, k2, k3, k4, k5, k6 = jax.random.split(key, 6)
    feat = jax.random.normal(k1, (B, D), dtype=jnp.float32) * 0.1
    right = jax.random.normal(k2, (B, D), dtype=jnp.float32) * 0.1
    wrong = jax.random.normal(k3, (B, W, D), dtype=jnp.float32) * 0.1

    loss = jax.block_until_ready(npair_loss(feat, right, wrong, force_pallas=True))
    ref = jax.block_until_ready(npair_loss_ref(feat, right, wrong))
    assert jnp.allclose(loss, ref, rtol=1e-4, atol=1e-5), (loss, ref)

    # Same tiny shape through the small-problem fast path (no Pallas).
    loss_fast = jax.block_until_ready(npair_loss(feat, right, wrong))
    assert jnp.allclose(loss_fast, ref, rtol=1e-4, atol=1e-5), (loss_fast, ref)

    # Case 2: larger, non-divisible batch exercising the grid, the partial
    # (masked) edge block and the per-block partial outputs (forced small tile).
    B2 = 150
    feat2 = jax.random.normal(k4, (B2, D), dtype=jnp.float32) * 0.1
    right2 = jax.random.normal(k5, (B2, D), dtype=jnp.float32) * 0.1
    wrong2 = jax.random.normal(k6, (B2, W, D), dtype=jnp.float32) * 0.1

    loss2 = jax.block_until_ready(
        npair_loss(feat2, right2, wrong2, max_rows_per_step=64, force_pallas=True))
    ref2 = jax.block_until_ready(npair_loss_ref(feat2, right2, wrong2))
    assert jnp.allclose(loss2, ref2, rtol=1e-4, atol=1e-5), (loss2, ref2)

    print("KERNEL_OK")
</pallas_src>

<mosaic_0001>
module attributes {stable_mosaic.version = 11 : i64} {
  func.func @_npair_loss_kernel(%arg0: i32, %arg1: memref<4x32xf32, #tpu.memory_space<vmem>>, %arg2: memref<4x32xf32, #tpu.memory_space<vmem>>, %arg3: memref<4x256xf32, #tpu.memory_space<vmem>>, %arg4: memref<1x1x128xf32, #tpu.memory_space<vmem>>) attributes {dimension_semantics = [#tpu.dimension_semantics<parallel>], iteration_bounds = array<i64: 1>, scalar_prefetch = 0 : i64, scratch_operands = 0 : i64, tpu.core_type = #tpu.core_type<tc>, window_params = [{transform_indices = @transform_0, window_bounds = array<i64: 4, 32>}, {transform_indices = @transform_1, window_bounds = array<i64: 4, 32>}, {transform_indices = @transform_2, window_bounds = array<i64: 4, 256>}, {transform_indices = @transform_3, window_bounds = array<i64: 1, 1, 128>}]} {
    %c0 = arith.constant 0 : index
    %c0_0 = arith.constant 0 : index
    %0 = vector.load %arg1[%c0, %c0_0] : memref<4x32xf32, #tpu.memory_space<vmem>>, vector<4x32xf32>
    %c0_1 = arith.constant 0 : index
    %c0_2 = arith.constant 0 : index
    %1 = vector.load %arg2[%c0_1, %c0_2] : memref<4x32xf32, #tpu.memory_space<vmem>>, vector<4x32xf32>
    %c0_3 = arith.constant 0 : index
    %c0_4 = arith.constant 0 : index
    %2 = vector.load %arg3[%c0_3, %c0_4] : memref<4x256xf32, #tpu.memory_space<vmem>>, vector<4x256xf32>
    %c4_i32 = arith.constant 4 : i32
    %3 = arith.muli %arg0, %c4_i32 : i32
    %4 = tpu.iota {dimensions = array<i32: 0>} : vector<4x1xi32>
    %5 = vector.broadcast %3 : i32 to vector<4x1xi32>
    %6 = arith.addi %5, %4 : vector<4x1xi32>
    %c4_i32_5 = arith.constant 4 : i32
    %7 = vector.broadcast %c4_i32_5 : i32 to vector<4x1xi32>
    %8 = arith.cmpi slt, %6, %7 : vector<4x1xi32>
    %9 = arith.mulf %1, %0 : vector<4x32xf32>
    %cst = arith.constant dense<0.000000e+00> : vector<4xf32>
    %10 = vector.multi_reduction <add>, %9, %cst [1] : vector<4x32xf32> to vector<4xf32>
    %11 = vector.shape_cast %10 : vector<4xf32> to vector<4x1xf32>
    %cst_6 = arith.constant 0.000000e+00 : f32
    %12 = vector.broadcast %cst_6 : f32 to vector<4x1xf32>
    %13 = vector.extract_strided_slice %2 {offsets = [0, 0], sizes = [4, 32], strides = [1, 1]} : vector<4x256xf32> to vector<4x32xf32>
    %14 = arith.mulf %13, %0 : vector<4x32xf32>
    %cst_7 = arith.constant dense<0.000000e+00> : vector<4xf32>
    %15 = vector.multi_reduction <add>, %14, %cst_7 [1] : vector<4x32xf32> to vector<4xf32>
    %16 = vector.shape_cast %15 : vector<4xf32> to vector<4x1xf32>
    %17 = arith.subf %16, %11 : vector<4x1xf32>
    %18 = math.exp %17 : vector<4x1xf32>
    %19 = arith.addf %12, %18 : vector<4x1xf32>
    %20 = vector.extract_strided_slice %2 {offsets = [0, 32], sizes = [4, 32], strides = [1, 1]} : vector<4x256xf32> to vector<4x32xf32>
    %21 = arith.mulf %20, %0 : vector<4x32xf32>
    %cst_8 = arith.constant dense<0.000000e+00> : vector<4xf32>
    %22 = vector.multi_reduction <add>, %21, %cst_8 [1] : vector<4x32xf32> to vector<4xf32>
    %23 = vector.shape_cast %22 : vector<4xf32> to vector<4x1xf32>
    %24 = arith.subf %23, %11 : vector<4x1xf32>
    %25 = math.exp %24 : vector<4x1xf32>
    %26 = arith.addf %19, %25 : vector<4x1xf32>
    %27 = vector.extract_strided_slice %2 {offsets = [0, 64], sizes = [4, 32], strides = [1, 1]} : vector<4x256xf32> to vector<4x32xf32>
    %28 = arith.mulf %27, %0 : vector<4x32xf32>
    %cst_9 = arith.constant dense<0.000000e+00> : vector<4xf32>
    %29 = vector.multi_reduction <add>, %28, %cst_9 [1] : vector<4x32xf32> to vector<4xf32>
    %30 = vector.shape_cast %29 : vector<4xf32> to vector<4x1xf32>
    %31 = arith.subf %30, %11 : vector<4x1xf32>
    %32 = math.exp %31 : vector<4x1xf32>
    %33 = arith.addf %26, %32 : vector<4x1xf32>
    %34 = vector.extract_strided_slice %2 {offsets = [0, 96], sizes = [4, 32], strides = [1, 1]} : vector<4x256xf32> to vector<4x32xf32>
    %35 = arith.mulf %34, %0 : vector<4x32xf32>
    %cst_10 = arith.constant dense<0.000000e+00> : vector<4xf32>
    %36 = vector.multi_reduction <add>, %35, %cst_10 [1] : vector<4x32xf32> to vector<4xf32>
    %37 = vector.shape_cast %36 : vector<4xf32> to vector<4x1xf32>
    %38 = arith.subf %37, %11 : vector<4x1xf32>
    %39 = math.exp %38 : vector<4x1xf32>
    %40 = arith.addf %33, %39 : vector<4x1xf32>
    %41 = vector.extract_strided_slice %2 {offsets = [0, 128], sizes = [4, 32], strides = [1, 1]} : vector<4x256xf32> to vector<4x32xf32>
    %42 = arith.mulf %41, %0 : vector<4x32xf32>
    %cst_11 = arith.constant dense<0.000000e+00> : vector<4xf32>
    %43 = vector.multi_reduction <add>, %42, %cst_11 [1] : vector<4x32xf32> to vector<4xf32>
    %44 = vector.shape_cast %43 : vector<4xf32> to vector<4x1xf32>
    %45 = arith.subf %44, %11 : vector<4x1xf32>
    %46 = math.exp %45 : vector<4x1xf32>
    %47 = arith.addf %40, %46 : vector<4x1xf32>
    %48 = vector.extract_strided_slice %2 {offsets = [0, 160], sizes = [4, 32], strides = [1, 1]} : vector<4x256xf32> to vector<4x32xf32>
    %49 = arith.mulf %48, %0 : vector<4x32xf32>
    %cst_12 = arith.constant dense<0.000000e+00> : vector<4xf32>
    %50 = vector.multi_reduction <add>, %49, %cst_12 [1] : vector<4x32xf32> to vector<4xf32>
    %51 = vector.shape_cast %50 : vector<4xf32> to vector<4x1xf32>
    %52 = arith.subf %51, %11 : vector<4x1xf32>
    %53 = math.exp %52 : vector<4x1xf32>
    %54 = arith.addf %47, %53 : vector<4x1xf32>
    %55 = vector.extract_strided_slice %2 {offsets = [0, 192], sizes = [4, 32], strides = [1, 1]} : vector<4x256xf32> to vector<4x32xf32>
    %56 = arith.mulf %55, %0 : vector<4x32xf32>
    %cst_13 = arith.constant dense<0.000000e+00> : vector<4xf32>
    %57 = vector.multi_reduction <add>, %56, %cst_13 [1] : vector<4x32xf32> to vector<4xf32>
    %58 = vector.shape_cast %57 : vector<4xf32> to vector<4x1xf32>
    %59 = arith.subf %58, %11 : vector<4x1xf32>
    %60 = math.exp %59 : vector<4x1xf32>
    %61 = arith.addf %54, %60 : vector<4x1xf32>
    %62 = vector.extract_strided_slice %2 {offsets = [0, 224], sizes = [4, 32], strides = [1, 1]} : vector<4x256xf32> to vector<4x32xf32>
    %63 = arith.mulf %62, %0 : vector<4x32xf32>
    %cst_14 = arith.constant dense<0.000000e+00> : vector<4xf32>
    %64 = vector.multi_reduction <add>, %63, %cst_14 [1] : vector<4x32xf32> to vector<4xf32>
    %65 = vector.shape_cast %64 : vector<4xf32> to vector<4x1xf32>
    %66 = arith.subf %65, %11 : vector<4x1xf32>
    %67 = math.exp %66 : vector<4x1xf32>
    %68 = arith.addf %61, %67 : vector<4x1xf32>
    %cst_15 = arith.constant 1.000000e+00 : f32
    %69 = vector.broadcast %cst_15 : f32 to vector<4x1xf32>
    %70 = arith.addf %68, %69 : vector<4x1xf32>
    %71 = math.log %70 : vector<4x1xf32>
    %cst_16 = arith.constant 0.000000e+00 : f32
    %72 = vector.broadcast %cst_16 : f32 to vector<4x1xf32>
    %73 = arith.select %8, %71, %72 : vector<4x1xi1>, vector<4x1xf32>
    %74 = arith.mulf %1, %1 : vector<4x32xf32>
    %cst_17 = arith.constant dense<0.000000e+00> : vector<4xf32>
    %75 = vector.multi_reduction <add>, %74, %cst_17 [1] : vector<4x32xf32> to vector<4xf32>
    %76 = vector.shape_cast %75 : vector<4xf32> to vector<4x1xf32>
    %cst_18 = arith.constant 0.000000e+00 : f32
    %77 = vector.broadcast %cst_18 : f32 to vector<4x1xf32>
    %78 = arith.select %8, %76, %77 : vector<4x1xi1>, vector<4x1xf32>
    %79 = arith.mulf %0, %0 : vector<4x32xf32>
    %cst_19 = arith.constant dense<0.000000e+00> : vector<4xf32>
    %80 = vector.multi_reduction <add>, %79, %cst_19 [1] : vector<4x32xf32> to vector<4xf32>
    %81 = vector.shape_cast %80 : vector<4xf32> to vector<4x1xf32>
    %cst_20 = arith.constant 0.000000e+00 : f32
    %82 = vector.broadcast %cst_20 : f32 to vector<4x1xf32>
    %83 = arith.select %8, %81, %82 : vector<4x1xi1>, vector<4x1xf32>
    %84 = arith.mulf %2, %2 : vector<4x256xf32>
    %cst_21 = arith.constant dense<0.000000e+00> : vector<4xf32>
    %85 = vector.multi_reduction <add>, %84, %cst_21 [1] : vector<4x256xf32> to vector<4xf32>
    %86 = vector.shape_cast %85 : vector<4xf32> to vector<4x1xf32>
    %cst_22 = arith.constant 0.000000e+00 : f32
    %87 = vector.broadcast %cst_22 : f32 to vector<4x1xf32>
    %88 = arith.select %8, %86, %87 : vector<4x1xi1>, vector<4x1xf32>
    %89 = vector.shape_cast %73 : vector<4x1xf32> to vector<1x4x1xf32>
    %cst_23 = arith.constant dense<0.000000e+00> : vector<1xf32>
    %90 = vector.multi_reduction <add>, %89, %cst_23 [1, 2] : vector<1x4x1xf32> to vector<1xf32>
    %91 = vector.shape_cast %90 : vector<1xf32> to vector<1x1x1xf32>
    %92 = vector.extract %91[0, 0, 0] : f32 from vector<1x1x1xf32>
    %93 = vector.broadcast %92 : f32 to vector<1x1xf32>
    %94 = vector.shape_cast %78 : vector<4x1xf32> to vector<1x4x1xf32>
    %cst_24 = arith.constant dense<0.000000e+00> : vector<1xf32>
    %95 = vector.multi_reduction <add>, %94, %cst_24 [1, 2] : vector<1x4x1xf32> to vector<1xf32>
    %96 = vector.shape_cast %95 : vector<1xf32> to vector<1x1x1xf32>
    %97 = vector.extract %96[0, 0, 0] : f32 from vector<1x1x1xf32>
    %98 = vector.broadcast %97 : f32 to vector<1x1xf32>
    %99 = vector.shape_cast %83 : vector<4x1xf32> to vector<1x4x1xf32>
    %cst_25 = arith.constant dense<0.000000e+00> : vector<1xf32>
    %100 = vector.multi_reduction <add>, %99, %cst_25 [1, 2] : vector<1x4x1xf32> to vector<1xf32>
    %101 = vector.shape_cast %100 : vector<1xf32> to vector<1x1x1xf32>
    %102 = vector.extract %101[0, 0, 0] : f32 from vector<1x1x1xf32>
    %103 = vector.broadcast %102 : f32 to vector<1x1xf32>
    %104 = vector.shape_cast %88 : vector<4x1xf32> to vector<1x4x1xf32>
    %cst_26 = arith.constant dense<0.000000e+00> : vector<1xf32>
    %105 = vector.multi_reduction <add>, %104, %cst_26 [1, 2] : vector<1x4x1xf32> to vector<1xf32>
    %106 = vector.shape_cast %105 : vector<1xf32> to vector<1x1x1xf32>
    %107 = vector.extract %106[0, 0, 0] : f32 from vector<1x1x1xf32>
    %108 = vector.broadcast %107 : f32 to vector<1x1xf32>
    %109 = tpu.iota {dimensions = array<i32: 2>} : vector<1x1x128xi32>
    %c0_i32 = arith.constant 0 : i32
    %110 = vector.broadcast %c0_i32 : i32 to vector<1x1x128xi32>
    %111 = arith.cmpi eq, %109, %110 : vector<1x1x128xi32>
    %cst_27 = arith.constant 0.000000e+00 : f32
    %112 = vector.shape_cast %93 : vector<1x1xf32> to vector<1x1x1xf32>
    %113 = vector.broadcast %112 : vector<1x1x1xf32> to vector<1x1x128xf32>
    %114 = vector.broadcast %cst_27 : f32 to vector<1x1x128xf32>
    %115 = arith.select %111, %113, %114 : vector<1x1x128xi1>, vector<1x1x128xf32>
    %c1_i32 = arith.constant 1 : i32
    %116 = vector.broadcast %c1_i32 : i32 to vector<1x1x128xi32>
    %117 = arith.cmpi eq, %109, %116 : vector<1x1x128xi32>
    %cst_28 = arith.constant 0.000000e+00 : f32
    %118 = vector.shape_cast %98 : vector<1x1xf32> to vector<1x1x1xf32>
    %119 = vector.broadcast %118 : vector<1x1x1xf32> to vector<1x1x128xf32>
    %120 = vector.broadcast %cst_28 : f32 to vector<1x1x128xf32>
    %121 = arith.select %117, %119, %120 : vector<1x1x128xi1>, vector<1x1x128xf32>
    %122 = arith.addf %115, %121 : vector<1x1x128xf32>
    %c2_i32 = arith.constant 2 : i32
    %123 = vector.broadcast %c2_i32 : i32 to vector<1x1x128xi32>
    %124 = arith.cmpi eq, %109, %123 : vector<1x1x128xi32>
    %cst_29 = arith.constant 0.000000e+00 : f32
    %125 = vector.shape_cast %103 : vector<1x1xf32> to vector<1x1x1xf32>
    %126 = vector.broadcast %125 : vector<1x1x1xf32> to vector<1x1x128xf32>
    %127 = vector.broadcast %cst_29 : f32 to vector<1x1x128xf32>
    %128 = arith.select %124, %126, %127 : vector<1x1x128xi1>, vector<1x1x128xf32>
    %129 = arith.addf %122, %128 : vector<1x1x128xf32>
    %c3_i32 = arith.constant 3 : i32
    %130 = vector.broadcast %c3_i32 : i32 to vector<1x1x128xi32>
    %131 = arith.cmpi eq, %109, %130 : vector<1x1x128xi32>
    %cst_30 = arith.constant 0.000000e+00 : f32
    %132 = vector.shape_cast %108 : vector<1x1xf32> to vector<1x1x1xf32>
    %133 = vector.broadcast %132 : vector<1x1x1xf32> to vector<1x1x128xf32>
    %134 = vector.broadcast %cst_30 : f32 to vector<1x1x128xf32>
    %135 = arith.select %131, %133, %134 : vector<1x1x128xi1>, vector<1x1x128xf32>
    %136 = arith.addf %129, %135 : vector<1x1x128xf32>
    %c0_31 = arith.constant 0 : index
    %c0_32 = arith.constant 0 : index
    %c0_33 = arith.constant 0 : index
    %137 = vector.load %arg4[%c0_31, %c0_32, %c0_33] : memref<1x1x128xf32, #tpu.memory_space<vmem>>, vector<1x1x128xf32>
    tpu.vector_store %arg4[%c0_31, %c0_32, %c0_33], %136 {strides = array<i32>} : memref<1x1x128xf32, #tpu.memory_space<vmem>>, vector<1x1x128xf32>,
    return
  }
  func.func @transform_0(%arg0: i32) -> (i32, i32) {
    %c0_i32 = arith.constant 0 : i32
    %c0_i32_0 = arith.constant 0 : i32
    return %arg0, %c0_i32 : i32, i32
  }
  func.func @transform_1(%arg0: i32) -> (i32, i32) {
    %c0_i32 = arith.constant 0 : i32
    %c0_i32_0 = arith.constant 0 : i32
    return %arg0, %c0_i32 : i32, i32
  }
  func.func @transform_2(%arg0: i32) -> (i32, i32) {
    %c0_i32 = arith.constant 0 : i32
    %c0_i32_0 = arith.constant 0 : i32
    return %arg0, %c0_i32 : i32, i32
  }
  func.func @transform_3(%arg0: i32) -> (i32, i32, i32) {
    %c0_i32 = arith.constant 0 : i32
    %c0_i32_0 = arith.constant 0 : i32
    %c0_i32_1 = arith.constant 0 : i32
    return %arg0, %c0_i32, %c0_i32_0 : i32, i32, i32
  }
}

</mosaic_0001>

<bundles_post_ra>
// kernel: tpu_custom_call.1
= control target key start
LH: loop header
LB: loop body
LE: loop exit
PB: predicated region body
PF: predicated region fallthrough
CT: control target
= control target key end

     0   :  { %8 = vsyncpa [#allocation3], 0  ;;  %s488_s0 = inlined_call_operand.hbm [shape: f32[4,32], index: 0, kind: input, shape index: {}]   ;;  %s489_s1 = inlined_call_operand.hbm [shape: f32[4,32], index: 1, kind: input, shape index: {}]   ;;  %s490_s2 = inlined_call_operand.hbm [shape: f32[4,256], index: 2, kind: input, shape index: {}]   ;;  %s491_s3 = inlined_call_operand.hbm [shape: f32[1,1,128], index: 3, kind: output, shape index: {}]  }
   0x1   :  { %9 = vsyncpa [#allocation6], 0 }
   0x2   :  { %10 = vsyncpa [#allocation4], 0  ;;  %s392_s12 = smov [#allocation5]   ;;  %s393_s14 = smov [#allocation2]  }
   0x3   :  { %s27_s13 = sshll.u32 %s392_s12, 4  ;;  %s17_s15 = sshll.u32 %s393_s14, 4  ;;  %s28_s13 = int_to_ptr.vmem [resolvable:$true] %s27_s13  ;;  %s18_s15 = int_to_ptr.vmem [resolvable:$true] %s17_s15 }
   0x4   :  { %s298_s18 = scalar_lea.hbm %s489_s1, 64 }
   0x5   :  { %p299_p0 = scmp.ne.s32.totalorder %s489_s1, %s298_s18  ;;  %p302_p1 = scmp.lt.u32.totalorder %s298_s18, %s489_s1 }
   0x7   :  { %p304_p2 = pnand %p302_p1, %p299_p0 }
   0x9   :  { %307 = shalt.err (!%p304_p2)
}
   0xa   :  { %s308_s23 = scalar_lea.vmem %s28_s13, 64  ;;  %p313_p4 = scmp.lt.s32.totalorder %s28_s13, %s28_s13 }
   0xb   :  { %p309_p3 = scmp.ne.s32.totalorder %s28_s13, %s308_s23  ;;  %p314_p5 = scmp.lt.s32.totalorder %s308_s23, %s308_s23 }
   0xd   :  { %p315_p6 = por %p314_p5, %p313_p4 }
   0xf   :  { %p316_p7 = pnand %p315_p6, %p309_p3 }
  0x11   :  { %319 = shalt.err (!%p316_p7)
}
  0x12   :  { %30 = dma.hbm_to_vmem [thread:$0]  %s489_s1, 64, %s28_s13, [#allocation6]  }
  0x13   :  { %s320_s28 = scalar_lea.hbm %s488_s0, 64 }
  0x14   :  { %p321_p8 = scmp.ne.s32.totalorder %s488_s0, %s320_s28  ;;  %p324_p9 = scmp.lt.u32.totalorder %s320_s28, %s488_s0 }
  0x16   :  { %p326_p10 = pnand %p324_p9, %p321_p8 }
  0x18   :  { %329 = shalt.err (!%p326_p10)
}
  0x19   :  { %s330_s6 = scalar_lea.vmem %s18_s15, 64  ;;  %p335_p12 = scmp.lt.s32.totalorder %s18_s15, %s18_s15 }
  0x1a   :  { %p331_p11 = scmp.ne.s32.totalorder %s18_s15, %s330_s6  ;;  %p336_p13 = scmp.lt.s32.totalorder %s330_s6, %s330_s6 }
  0x1c   :  { %p337_p0 = por %p336_p13, %p335_p12 }
  0x1e   :  { %p338_p1 = pnand %p337_p0, %p331_p11 }
  0x20   :  { %341 = shalt.err (!%p338_p1)
}
  0x21   :  { %20 = dma.hbm_to_vmem [thread:$0]  %s488_s0, 64, %s18_s15, [#allocation3]  }
  0x22   :  { %s394_s8 = smov [#allocation7]   ;;  %s342_s12 = scalar_lea.hbm %s490_s2, 128 }
  0x23   :  { %s37_s9 = sshll.u32 %s394_s8, 4  ;;  %p343_p2 = scmp.ne.s32.totalorder %s490_s2, %s342_s12  ;;  %s38_s9 = int_to_ptr.vmem [resolvable:$true] %s37_s9 }
  0x24   :  { %p346_p3 = scmp.lt.u32.totalorder %s342_s12, %s490_s2 }
  0x26   :  { %p348_p4 = pnand %p346_p3, %p343_p2 }
  0x28   :  { %351 = shalt.err (!%p348_p4)
}
  0x29   :  { %s352_s18 = scalar_lea.vmem %s38_s9, 128  ;;  %p357_p6 = scmp.lt.s32.totalorder %s38_s9, %s38_s9 }
  0x2a   :  { %p353_p5 = scmp.ne.s32.totalorder %s38_s9, %s352_s18  ;;  %p358_p7 = scmp.lt.s32.totalorder %s352_s18, %s352_s18 }
  0x2c   :  { %p359_p8 = por %p358_p7, %p357_p6 }
  0x2e   :  { %p360_p9 = pnand %p359_p8, %p353_p5 }
  0x30   :  { %363 = shalt.err (!%p360_p9)
}
  0x31   :  { %40 = dma.hbm_to_vmem [thread:$0]  %s490_s2, 128, %s38_s9, [#allocation6]  }
  0x32   :  { %386 = dma.done.wait [#allocation3], 64  }
  0x33   :  { %387 = vsyncadd [#allocation3], 4294967232 }
  0x34   :  { %388 = dma.done.wait [#allocation6], 192  }
  0x35   :  { %389 = vsyncadd [#allocation6], 4294967104  ;;  %v50_v0 = vld [vmem:[#allocation2] sm:$0xf]  ;;  %s395_s19 = smov 32   ;;  %s396_s20 = smov 96   ;;  %v54_v54 = vlaneseq }
  0x36   :  { %73 = vrot.lane.b32.xlu0 %v50_v0, %s395_s19  ;;  %103 = vrot.lane.b32.xlu1 %v50_v0, %s396_s20  ;;  %s397_s21 = smov 64   ;;  %v52_v1 = vld [vmem:[#allocation7] sm:$0xff]  ;;  %v51_v8 = vld [vmem:[#allocation5] sm:$0xf]  ;;  %vm60_vm0 = vcmask 257024   ;;  %vm183_vm1 = vcmask 1043456   ;;  %v174_v39 = vmul.f32 %v50_v0, %v50_v0 }
  0x37   :  { %v64_v9 = vmul.f32 %v52_v1, %v50_v0  ;;  %v59_v10 = vmul.f32 %v51_v8, %v50_v0  ;;  %v119_v13 = vrot.slane %v52_v1, 4  ;;  %v179_v22 = vmul.f32 %v52_v1, %v52_v1  ;;  %s398_s25 = smov [#allocation8]  }
  0x38   :  { %v169_v27 = vmul.f32 %v51_v8, %v51_v8  ;;  %v175_v42 = vsel %vm60_vm0, %v174_v39, 0.0  ;;  %v55_v59 = vshrl.u32 %v54_v54, 7  ;;  %vm190_vm3 = vcmask 3072   ;;  %s255_s26 = sshll.u32 %s398_s25, 4  ;;  %s256_s26 = int_to_ptr.vmem [resolvable:$true] %s255_s26 }
  0x39   :  { %v65_v11 = vsel %vm60_vm0, %v64_v9, 0.0  ;;  %v61_v12 = vsel %vm60_vm0, %v59_v10, 0.0  ;;  %v121_v16 = vmul.f32 %v119_v13, %v50_v0  ;;  %v181_v30 = vcombine.high %v179_v22, %v179_v22  ;;  %s364_s27 = scalar_lea.vmem %s256_s26, 16  ;;  %s368_s28 = scalar_lea.vmem %s256_s26, 32 }
  0x3a   :  { %88 = vrot.lane.b32.xlu0 %v50_v0, %s397_s21  ;;  %v170_v35 = vsel %vm60_vm0, %v169_v27, 0.0  ;;  %v184_v37 = vsel %vm183_vm1, %v179_v22, 0.0  ;;  %vm58_vm2 = vcmp.lt.s32.totalorder %v55_v59, 4  ;;  %p365_p10 = scmp.ne.s32.totalorder %s256_s26, %s364_s27  ;;  %p369_p11 = scmp.lt.s32.totalorder %s256_s26, %s256_s26 }
  0x3b   :  { %v122_v21 = vsel %vm60_vm0, %v121_v16, 0.0  ;;  %v185_v38 = vsel %vm183_vm1, %v181_v30, 0.0  ;;  %p370_p12 = scmp.lt.s32.totalorder %s368_s28, %s364_s27 }
  0x3c   :  { %v186_v41 = vadd.f32 %v185_v38, %v184_v37 }
  0x3d   :  { %p371_p13 = por %p370_p12, %p369_p11 }
  0x3f   :  { %p372_p0 = pnand %p371_p13, %p365_p10 }
  0xa8   :  { %v74_v2 = vpop.permute.xlu0 %73  ;;  %v104_v3 = vpop.permute.xlu1 %103 }
  0xa9   :  { %v76_v4 = vmul.f32 %v74_v2, %v52_v1  ;;  %v106_v5 = vmul.f32 %v104_v3, %v52_v1 }
  0xab   :  { %78 = vrot.lane.b32.xlu1 %v76_v4, %s396_s20 }
  0xac   :  { %v89_v6 = vpop.permute.xlu0 %88 }
  0xad   :  { %v91_v7 = vmul.f32 %v89_v6, %v52_v1 }
  0xaf   :  { %108 = vrot.lane.b32.xlu1 %v106_v5, %s395_s19  ;;  %93 = vrot.lane.b32.xlu0 %v91_v7, %s397_s21 }
  0xb3   :  { %141 = vrot.lane.b32.xlu1 %v52_v1, %s397_s21  ;;  %129 = vrot.lane.b32.xlu0 %v52_v1, %s396_s20 }
  0xb7   :  { %153 = vrot.lane.b32.xlu0 %v52_v1, %s395_s19 }
  0xd6   :  { %66 = vadd.xlane.f32.xlu0 %v65_v11 }
  0xd7   :  { %62 = vadd.xlane.f32.xlu1 %v61_v12 }
 0x11d   :  { %v79_v14 = vpop.permute.xlu1 %78 }
 0x11e   :  { %v81_v15 = vsel %vm60_vm0, %v79_v14, 0.0 }
 0x11f   :  { %82 = vadd.xlane.f32.xlu0 %v81_v15 }
 0x121   :  { %v109_v17 = vpop.permute.xlu1 %108  ;;  %v94_v18 = vpop.permute.xlu0 %93 }
 0x122   :  { %v111_v19 = vsel %vm60_vm0, %v109_v17, 0.0  ;;  %v96_v20 = vsel %vm60_vm0, %v94_v18, 0.0 }
 0x123   :  { %112 = vadd.xlane.f32.xlu0 %v111_v19  ;;  %97 = vadd.xlane.f32.xlu1 %v96_v20 }
 0x125   :  { %v142_v23 = vpop.permute.xlu1 %141  ;;  %v130_v24 = vpop.permute.xlu0 %129 }
 0x126   :  { %v143_v25 = vrot.slane %v142_v23, 4  ;;  %v131_v26 = vrot.slane %v130_v24, 4 }
 0x127   :  { %123 = vadd.xlane.f32.xlu1 %v122_v21 }
 0x128   :  { %v133_v28 = vmul.f32 %v131_v26, %v50_v0  ;;  %v145_v29 = vmul.f32 %v143_v25, %v50_v0 }
 0x129   :  { %v154_v31 = vpop.permute.xlu0 %153 }
 0x12a   :  { %v155_v32 = vrot.slane %v154_v31, 4  ;;  %v134_v33 = vsel %vm60_vm0, %v133_v28, 0.0  ;;  %v146_v34 = vsel %vm60_vm0, %v145_v29, 0.0 }
 0x12b   :  { %135 = vadd.xlane.f32.xlu0 %v134_v33  ;;  %147 = vadd.xlane.f32.xlu1 %v146_v34 }
 0x12c   :  { %v157_v36 = vmul.f32 %v155_v32, %v50_v0 }
 0x12e   :  { %v158_v40 = vsel %vm60_vm0, %v157_v36, 0.0 }
 0x12f   :  { %159 = vadd.xlane.f32.xlu0 %v158_v40  ;;  %171 = vadd.xlane.f32.xlu1 %v170_v35 }
 0x133   :  { %187 = vadd.xlane.f32.xlu1 %v186_v41  ;;  %176 = vadd.xlane.f32.xlu0 %v175_v42 }
 0x163   :  { %v67_v43 = vpop.xlane.xlu0 %66 }
 0x164   :  { %v63_v44 = vpop.xlane.xlu1 %62 }
 0x165   :  { %v68_v45 = vsub.f32 %v67_v43, %v63_v44 }
 0x167   :  { %v69_v47 = vmul.f32 1.442695, %v68_v45 }
 0x169   :  { %280 = vpow2.f32 %v69_v47 }
 0x173   :  { %v281_v1 = vpop.eup %280 }
 0x1ac   :  { %v83_v46 = vpop.xlane.xlu0 %82 }
 0x1ad   :  { %v84_v48 = vsub.f32 %v83_v46, %v63_v44 }
 0x1af   :  { %v85_v49 = vmul.f32 1.442695, %v84_v48 }
 0x1b0   :  { %v113_v50 = vpop.xlane.xlu0 %112  ;;  %v98_v51 = vpop.xlane.xlu1 %97 }
 0x1b1   :  { %v114_v52 = vsub.f32 %v113_v50, %v63_v44  ;;  %v99_v53 = vsub.f32 %v98_v51, %v63_v44  ;;  %282 = vpow2.f32 %v85_v49 }
 0x1b3   :  { %v100_v55 = vmul.f32 1.442695, %v99_v53  ;;  %v115_v56 = vmul.f32 1.442695, %v114_v52 }
 0x1b4   :  { %v124_v57 = vpop.xlane.xlu1 %123 }
 0x1b5   :  { %v125_v58 = vsub.f32 %v124_v57, %v63_v44  ;;  %284 = vpow2.f32 %v100_v55 }
 0x1b6   :  { %286 = vpow2.f32 %v115_v56 }
 0x1b7   :  { %v126_v60 = vmul.f32 1.442695, %v125_v58 }
 0x1b8   :  { %v136_v61 = vpop.xlane.xlu0 %135  ;;  %v148_v62 = vpop.xlane.xlu1 %147 }
 0x1b9   :  { %288 = vpow2.f32 %v126_v60  ;;  %v137_v63 = vsub.f32 %v136_v61, %v63_v44  ;;  %v149_v0 = vsub.f32 %v148_v62, %v63_v44 }
 0x1bb   :  { %v138_v2 = vmul.f32 1.442695, %v137_v63  ;;  %v150_v3 = vmul.f32 1.442695, %v149_v0  ;;  %v283_v4 = vpop.eup %282  ;;  %v232_v0 = vand.u32 127, %v54_v54 }
 0x1bc   :  { %v160_v5 = vpop.xlane.xlu0 %159  ;;  %v172_v6 = vpop.xlane.xlu1 %171  ;;  %v87_v10 = vadd.f32 %v283_v4, %v281_v1 }
 0x1bd   :  { %290 = vpow2.f32 %v138_v2  ;;  %v161_v7 = vsub.f32 %v160_v5, %v63_v44  ;;  %v173_v8 = vsel %vm58_vm2, %v172_v6, 0.0  ;;  %vm233_vm4 = vcmp.eq.s32.totalorder %v232_v0, 0 }
 0x1be   :  { %v201_v9 = vsel %vm190_vm3, %v173_v8, 0.0  ;;  %292 = vpow2.f32 %v150_v3  ;;  %vm236_vm5 = vcmp.eq.s32.totalorder %v232_v0, 1  ;;  %vm240_vm6 = vcmp.eq.s32.totalorder %v232_v0, 2 }
 0x1bf   :  { %v162_v11 = vmul.f32 1.442695, %v161_v7  ;;  %202 = vadd.xlane.f32.xlu1 %v201_v9  ;;  %v285_v12 = vpop.eup %284  ;;  %vm244_vm7 = vcmp.eq.s32.totalorder %v232_v0, 3 }
 0x1c0   :  { %v188_v13 = vpop.xlane.xlu1 %187  ;;  %v102_v14 = vadd.f32 %v285_v12, %v87_v10  ;;  %v287_v16 = vpop.eup %286 }
 0x1c1   :  { %294 = vpow2.f32 %v162_v11  ;;  %v189_v15 = vsel %vm58_vm2, %v188_v13, 0.0  ;;  %v177_v29 = vpop.xlane.xlu0 %176 }
 0x1c2   :  { %v221_v17 = vsel %vm190_vm3, %v189_v15, 0.0  ;;  %v117_v19 = vadd.f32 %v287_v16, %v102_v14  ;;  %v178_v32 = vsel %vm58_vm2, %v177_v29, 0.0 }
 0x1c3   :  { %v289_v18 = vpop.eup %288  ;;  %222 = vadd.xlane.f32.xlu1 %v221_v17  ;;  %v211_v34 = vsel %vm190_vm3, %v178_v32, 0.0 }
 0x1c4   :  { %v128_v20 = vadd.f32 %v289_v18, %v117_v19 }
 0x1c7   :  { %v291_v21 = vpop.eup %290 }
 0x1c8   :  { %v140_v22 = vadd.f32 %v291_v21, %v128_v20  ;;  %v293_v23 = vpop.eup %292 }
 0x1ca   :  { %v152_v24 = vadd.f32 %v293_v23, %v140_v22 }
 0x1cb   :  { %v295_v25 = vpop.eup %294 }
 0x1cc   :  { %v164_v26 = vadd.f32 %v295_v25, %v152_v24 }
 0x1ce   :  { %v165_v27 = vadd.f32 1.0, %v164_v26 }
 0x1d0   :  { %296 = vlog2.f32 %v165_v27 }
 0x1da   :  { %v297_v28 = vpop.eup %296 }
 0x1db   :  { %v167_v30 = vmul.f32 0.6931472, %v297_v28 }
 0x1dd   :  { %v168_v31 = vsel %vm58_vm2, %v167_v30, 0.0 }
 0x1de   :  { %v191_v33 = vsel %vm190_vm3, %v168_v31, 0.0 }
 0x1df   :  { %192 = vadd.xlane.f32.xlu0 %v191_v33 }
 0x1e3   :  { %212 = vadd.xlane.f32.xlu0 %v211_v34 }
 0x24c   :  { %v203_v35 = vpop.xlane.xlu1 %202 }
 0x24d   :  { %v204_v36 = vrot.slane %v203_v35, 4 }
 0x24f   :  { %v205_v38 = vadd.f32 %v204_v36, %v203_v35 }
 0x250   :  { %v223_v37 = vpop.xlane.xlu1 %222 }
 0x251   :  { %v224_v39 = vrot.slane %v223_v37, 4  ;;  %v206_v40 = vrot.slane %v205_v38, 2 }
 0x253   :  { %v225_v42 = vadd.f32 %v224_v39, %v223_v37  ;;  %v207_v47 = vadd.f32 %v206_v40, %v205_v38 }
 0x255   :  { %v226_v45 = vrot.slane %v225_v42, 2  ;;  %v208_v53 = vrot.slane %v207_v47, 1 }
 0x257   :  { %v227_v52 = vadd.f32 %v226_v45, %v225_v42  ;;  %v209_v59 = vadd.f32 %v208_v53, %v207_v47 }
 0x259   :  { %v228_v60 = vrot.slane %v227_v52, 1 }
 0x25b   :  { %v229_v63 = vadd.f32 %v228_v60, %v227_v52 }
 0x26c   :  { %v193_v41 = vpop.xlane.xlu0 %192 }
 0x26d   :  { %v194_v43 = vrot.slane %v193_v41, 4 }
 0x26f   :  { %v195_v44 = vadd.f32 %v194_v43, %v193_v41 }
 0x270   :  { %v213_v46 = vpop.xlane.xlu0 %212 }
 0x271   :  { %v196_v48 = vrot.slane %v195_v44, 2  ;;  %v214_v49 = vrot.slane %v213_v46, 4 }
 0x273   :  { %v215_v50 = vadd.f32 %v214_v49, %v213_v46  ;;  %v197_v51 = vadd.f32 %v196_v48, %v195_v44 }
 0x275   :  { %v216_v55 = vrot.slane %v215_v50, 2  ;;  %v198_v56 = vrot.slane %v197_v51, 1 }
 0x277   :  { %v217_v57 = vadd.f32 %v216_v55, %v215_v50  ;;  %v199_v58 = vadd.f32 %v198_v56, %v197_v51 }
 0x279   :  { %265 = vpush %v199_v58  ;;  %v218_v61 = vrot.slane %v217_v57, 1 }
 0x27a   :  { %267 = vpush %v209_v59 }
 0x27b   :  { %v219_v62 = vadd.f32 %v218_v61, %v217_v57 }
 0x27d   :  { %269 = vpush %v219_v62 }
 0x27e   :  { %271 = vpush %v229_v63 }
 0x2aa   :  { %s266_s2 = spop %265 }
 0x2ab   :  { %v234_v1 = vstv %s266_s2  ;;  %s268_s22 = spop %267 }
 0x2ac   :  { %v235_v2 = vsel %vm233_vm4, %v234_v1, 0.0  ;;  %v237_v3 = vstv %s268_s22 }
 0x2ad   :  { %v238_v4 = vsel %vm236_vm5, %v237_v3, 0.0 }
 0x2ae   :  { %s270_s23 = spop %269  ;;  %v239_v5 = vadd.f32 %v238_v4, %v235_v2 }
 0x2af   :  { %v241_v6 = vstv %s270_s23  ;;  %s272_s24 = spop %271 }
 0x2b0   :  { %v242_v7 = vsel %vm240_vm6, %v241_v6, 0.0  ;;  %v245_v8 = vstv %s272_s24 }
 0x2b1   :  { %v243_v9 = vadd.f32 %v242_v7, %v239_v5  ;;  %v246_v54 = vsel %vm244_vm7, %v245_v8, 0.0 }
 0x2b3   :  { %v247_v10 = vadd.f32 %v246_v54, %v243_v9 }
 0x2b5   :  { %248 = vst [vmem:[#allocation8] sm:$0x1] %v247_v10 }
 0x2b6   :  { %375 = shalt.err (!%p372_p0)
}
 0x2b7   :  { %s376_s4 = scalar_lea.hbm %s491_s3, 16 }
 0x2b8   :  { %p377_p1 = scmp.ne.s32.totalorder %s491_s3, %s376_s4  ;;  %p380_p2 = scmp.lt.u32.totalorder %s376_s4, %s491_s3 }
 0x2ba   :  { %p382_p3 = pnand %p380_p2, %p377_p1 }
 0x2bc   :  { %385 = shalt.err (!%p382_p3)
}
 0x2bd   :  { %258 = dma.vmem_to_hbm [thread:$0]  %s256_s26, 16, %s491_s3, [#allocation4]  }
 0x2be   :  { %390 = dma.done.wait [#allocation4], 16  }
 0x2bf   :  { %391 = vsyncadd [#allocation4], 4294967280 }
 0x2c0   :  { %262 = vsyncpa [#allocation3], 1 }
 0x2c1   :  { %263 = vsyncpa [#allocation6], 1 }
 0x2c2   :  { %264 = vsyncpa [#allocation4], 1 }

</bundles_post_ra>
